<compile_context>
chip_gen: v5e
topology: v5e:2x2
jax: 0.10.0
libtpu: 0.0.40
codegen_flags: <defaults>
</compile_context>

<pallas_src>
import jax
import jax.numpy as jnp
from jax.experimental import pallas as pl
from jax.experimental.pallas import tpu as pltpu


def _linear_policy_kernel(obs_ref, wT_ref, b_ref, out_ref):
    # obs_ref: [B, K]  (f32, VMEM)
    # wT_ref : [K, A]  (weight pre-transposed once at init)
    # b_ref  : [1, A]
    # out_ref: [B, A]
    obs = obs_ref[...].astype(jnp.float32)          # [B, K]
    acc = b_ref[...].astype(jnp.float32)            # [1, A] — bias as accumulator init

    K = wT_ref.shape[0]                             # static -> unrolled at trace time
    # Pure-VPU contraction: for tiny K/A an MXU matmul pays a fixed systolic
    # push+drain regardless of how empty the tile is; a short unrolled FMA
    # chain is strictly cheaper here.
    for k in range(K):
        acc = acc + obs[:, k:k + 1] * wT_ref[pl.ds(k, 1), :].astype(jnp.float32)

    out_ref[...] = acc.astype(out_ref.dtype)        # [B, A]


def make_linear_policy(weight, bias=None):
    """Build a forward fn for nn.Linear weights in PyTorch layout.

    weight: [act_len, obs_len]  (PyTorch nn.Linear layout)
    bias:   [act_len] or None
    Returns: forward(obs[B, obs_len]) -> [B, act_len]
    """
    assert weight.ndim == 2, f"weight must be 2-D [act, obs], got {weight.shape}"
    act_len, obs_len = weight.shape
    if bias is not None:
        assert bias.shape == (act_len,), (
            f"bias shape {bias.shape} does not match act_len={act_len}")

    # One-time layout prep, hoisted out of the per-call path (runs eagerly, once).
    wT = jnp.asarray(weight).T                      # [obs_len, act_len]
    if bias is None:
        b2 = jnp.zeros((1, act_len), dtype=weight.dtype)
    else:
        b2 = jnp.asarray(bias).reshape(1, act_len)  # broadcastable row

    def forward(obs):
        B, K = obs.shape
        assert K == obs_len, (
            f"expected obs feature dim {obs_len} (PyTorch [act,obs] weight layout), got {K}")
        return pl.pallas_call(
            _linear_policy_kernel,
            out_shape=jax.ShapeDtypeStruct((B, act_len), obs.dtype),
            # No grid: single invocation on whole-array VMEM-resident refs.
            in_specs=[
                pl.BlockSpec(memory_space=pltpu.MemorySpace.VMEM),  # obs
                pl.BlockSpec(memory_space=pltpu.MemorySpace.VMEM),  # wT
                pl.BlockSpec(memory_space=pltpu.MemorySpace.VMEM),  # bias row
            ],
            out_specs=pl.BlockSpec(memory_space=pltpu.MemorySpace.VMEM),
        )(obs, wT, b2)

    return jax.jit(forward)


if __name__ == "__main__":
    # LunarLanderContinuous-v2: obs_length=8, act_length=2
    obs_length, act_length, batch = 8, 2, 2

    key = jax.random.PRNGKey(0)
    k_obs, k_w, k_b = jax.random.split(key, 3)

    # Deterministic init mimicking nn.Linear default U(-1/sqrt(in), 1/sqrt(in)).
    bound = 1.0 / (obs_length ** 0.5)
    weight = jax.random.uniform(k_w, (act_length, obs_length), jnp.float32,
                                minval=-bound, maxval=bound)
    bias = jax.random.uniform(k_b, (act_length,), jnp.float32,
                              minval=-bound, maxval=bound)
    obs = jax.random.normal(k_obs, (batch, obs_length), jnp.float32)

    policy = make_linear_policy(weight, bias)       # one-time layout prep
    out = jax.block_until_ready(policy(obs))

    # Cross-check against plain JAX reference (PyTorch semantics: obs @ W.T + b).
    ref = obs @ weight.T + bias
    assert out.shape == (batch, act_length)
    assert jnp.allclose(out, ref, atol=1e-5, rtol=1e-5)
    print("KERNEL_OK")
</pallas_src>

<mosaic_0001>
module attributes {stable_mosaic.version = 11 : i64} {
  func.func @_linear_policy_kernel(%arg0: memref<2x8xf32, #tpu.memory_space<vmem>>, %arg1: memref<8x2xf32, #tpu.memory_space<vmem>>, %arg2: memref<1x2xf32, #tpu.memory_space<vmem>>, %arg3: memref<2x2xf32, #tpu.memory_space<vmem>>) attributes {dimension_semantics = [], scalar_prefetch = 0 : i64, scratch_operands = 0 : i64, tpu.core_type = #tpu.core_type<tc>} {
    %c0 = arith.constant 0 : index
    %c0_0 = arith.constant 0 : index
    %0 = vector.load %arg0[%c0, %c0_0] : memref<2x8xf32, #tpu.memory_space<vmem>>, vector<2x8xf32>
    %c0_1 = arith.constant 0 : index
    %c0_2 = arith.constant 0 : index
    %1 = vector.load %arg2[%c0_1, %c0_2] : memref<1x2xf32, #tpu.memory_space<vmem>>, vector<1x2xf32>
    %2 = vector.extract_strided_slice %0 {offsets = [0, 0], sizes = [2, 1], strides = [1, 1]} : vector<2x8xf32> to vector<2x1xf32>
    %c0_3 = arith.constant 0 : index
    %c0_4 = arith.constant 0 : index
    %3 = vector.load %arg1[%c0_3, %c0_4] : memref<8x2xf32, #tpu.memory_space<vmem>>, vector<1x2xf32>
    %4 = vector.broadcast %2 : vector<2x1xf32> to vector<2x2xf32>
    %5 = vector.broadcast %3 : vector<1x2xf32> to vector<2x2xf32>
    %6 = arith.mulf %4, %5 : vector<2x2xf32>
    %7 = vector.broadcast %1 : vector<1x2xf32> to vector<2x2xf32>
    %8 = arith.addf %7, %6 : vector<2x2xf32>
    %9 = vector.extract_strided_slice %0 {offsets = [0, 1], sizes = [2, 1], strides = [1, 1]} : vector<2x8xf32> to vector<2x1xf32>
    %c1 = arith.constant 1 : index
    %c0_5 = arith.constant 0 : index
    %10 = vector.load %arg1[%c1, %c0_5] : memref<8x2xf32, #tpu.memory_space<vmem>>, vector<1x2xf32>
    %11 = vector.broadcast %9 : vector<2x1xf32> to vector<2x2xf32>
    %12 = vector.broadcast %10 : vector<1x2xf32> to vector<2x2xf32>
    %13 = arith.mulf %11, %12 : vector<2x2xf32>
    %14 = arith.addf %8, %13 : vector<2x2xf32>
    %15 = vector.extract_strided_slice %0 {offsets = [0, 2], sizes = [2, 1], strides = [1, 1]} : vector<2x8xf32> to vector<2x1xf32>
    %c2 = arith.constant 2 : index
    %c0_6 = arith.constant 0 : index
    %16 = vector.load %arg1[%c2, %c0_6] : memref<8x2xf32, #tpu.memory_space<vmem>>, vector<1x2xf32>
    %17 = vector.broadcast %15 : vector<2x1xf32> to vector<2x2xf32>
    %18 = vector.broadcast %16 : vector<1x2xf32> to vector<2x2xf32>
    %19 = arith.mulf %17, %18 : vector<2x2xf32>
    %20 = arith.addf %14, %19 : vector<2x2xf32>
    %21 = vector.extract_strided_slice %0 {offsets = [0, 3], sizes = [2, 1], strides = [1, 1]} : vector<2x8xf32> to vector<2x1xf32>
    %c3 = arith.constant 3 : index
    %c0_7 = arith.constant 0 : index
    %22 = vector.load %arg1[%c3, %c0_7] : memref<8x2xf32, #tpu.memory_space<vmem>>, vector<1x2xf32>
    %23 = vector.broadcast %21 : vector<2x1xf32> to vector<2x2xf32>
    %24 = vector.broadcast %22 : vector<1x2xf32> to vector<2x2xf32>
    %25 = arith.mulf %23, %24 : vector<2x2xf32>
    %26 = arith.addf %20, %25 : vector<2x2xf32>
    %27 = vector.extract_strided_slice %0 {offsets = [0, 4], sizes = [2, 1], strides = [1, 1]} : vector<2x8xf32> to vector<2x1xf32>
    %c4 = arith.constant 4 : index
    %c0_8 = arith.constant 0 : index
    %28 = vector.load %arg1[%c4, %c0_8] : memref<8x2xf32, #tpu.memory_space<vmem>>, vector<1x2xf32>
    %29 = vector.broadcast %27 : vector<2x1xf32> to vector<2x2xf32>
    %30 = vector.broadcast %28 : vector<1x2xf32> to vector<2x2xf32>
    %31 = arith.mulf %29, %30 : vector<2x2xf32>
    %32 = arith.addf %26, %31 : vector<2x2xf32>
    %33 = vector.extract_strided_slice %0 {offsets = [0, 5], sizes = [2, 1], strides = [1, 1]} : vector<2x8xf32> to vector<2x1xf32>
    %c5 = arith.constant 5 : index
    %c0_9 = arith.constant 0 : index
    %34 = vector.load %arg1[%c5, %c0_9] : memref<8x2xf32, #tpu.memory_space<vmem>>, vector<1x2xf32>
    %35 = vector.broadcast %33 : vector<2x1xf32> to vector<2x2xf32>
    %36 = vector.broadcast %34 : vector<1x2xf32> to vector<2x2xf32>
    %37 = arith.mulf %35, %36 : vector<2x2xf32>
    %38 = arith.addf %32, %37 : vector<2x2xf32>
    %39 = vector.extract_strided_slice %0 {offsets = [0, 6], sizes = [2, 1], strides = [1, 1]} : vector<2x8xf32> to vector<2x1xf32>
    %c6 = arith.constant 6 : index
    %c0_10 = arith.constant 0 : index
    %40 = vector.load %arg1[%c6, %c0_10] : memref<8x2xf32, #tpu.memory_space<vmem>>, vector<1x2xf32>
    %41 = vector.broadcast %39 : vector<2x1xf32> to vector<2x2xf32>
    %42 = vector.broadcast %40 : vector<1x2xf32> to vector<2x2xf32>
    %43 = arith.mulf %41, %42 : vector<2x2xf32>
    %44 = arith.addf %38, %43 : vector<2x2xf32>
    %45 = vector.extract_strided_slice %0 {offsets = [0, 7], sizes = [2, 1], strides = [1, 1]} : vector<2x8xf32> to vector<2x1xf32>
    %c7 = arith.constant 7 : index
    %c0_11 = arith.constant 0 : index
    %46 = vector.load %arg1[%c7, %c0_11] : memref<8x2xf32, #tpu.memory_space<vmem>>, vector<1x2xf32>
    %47 = vector.broadcast %45 : vector<2x1xf32> to vector<2x2xf32>
    %48 = vector.broadcast %46 : vector<1x2xf32> to vector<2x2xf32>
    %49 = arith.mulf %47, %48 : vector<2x2xf32>
    %50 = arith.addf %44, %49 : vector<2x2xf32>
    %c0_12 = arith.constant 0 : index
    %c0_13 = arith.constant 0 : index
    %51 = vector.load %arg3[%c0_12, %c0_13] : memref<2x2xf32, #tpu.memory_space<vmem>>, vector<2x2xf32>
    tpu.vector_store %arg3[%c0_12, %c0_13], %50 {strides = array<i32>} : memref<2x2xf32, #tpu.memory_space<vmem>>, vector<2x2xf32>,
    return
  }
}

</mosaic_0001>

<bundles_post_ra>
// kernel: forward.1
= control target key start
LH: loop header
LB: loop body
LE: loop exit
PB: predicated region body
PF: predicated region fallthrough
CT: control target
= control target key end

     0   :  { %8 = vsyncpa [#allocation3], 0  ;;  %s283_s0 = inlined_call_operand.hbm [shape: f32[2,8], index: 0, kind: input, shape index: {}]   ;;  %s284_s1 = inlined_call_operand.hbm [shape: f32[8,2], index: 1, kind: input, shape index: {}]   ;;  %s285_s2 = inlined_call_operand.vmem [shape: f32[1,2], index: 2, kind: input, shape index: {}]   ;;  %s286_s3 = inlined_call_operand.hbm [shape: f32[2,2], index: 3, kind: output, shape index: {}]  }
   0x1   :  { %9 = vsyncpa [#allocation6], 0 }
   0x2   :  { %10 = vsyncpa [#allocation4], 0  ;;  %s16_s14 = sshll.u32 %s283_s0, 4  ;;  %s240_s15 = smov [#allocation2]   ;;  %s17_s14 = int_to_ptr.hbm [resolvable:$true] %s16_s14 }
   0x3   :  { %s18_s16 = sshll.u32 %s240_s15, 4  ;;  %s27_s19 = sshll.u32 %s284_s1, 4  ;;  %s19_s16 = int_to_ptr.vmem [resolvable:$true] %s18_s16  ;;  %s28_s19 = int_to_ptr.hbm [resolvable:$true] %s27_s19 }
   0x4   :  { %21 = dma.hbm_to_vmem [thread:$0]  %s17_s14, 32, %s19_s16, [#allocation3]  }
   0x5   :  { %s241_s20 = smov [#allocation5]  }
   0x6   :  { %s29_s21 = sshll.u32 %s241_s20, 4  ;;  %s30_s21 = int_to_ptr.vmem [resolvable:$true] %s29_s21 }
   0x7   :  { %32 = dma.hbm_to_vmem [thread:$0]  %s28_s19, 128, %s30_s21, [#allocation6]  }
   0x8   :  { %234 = dma.done.wait [#allocation3], 32  }
   0x9   :  { %235 = vsyncadd [#allocation3], 4294967264 }
   0xa   :  { %236 = dma.done.wait [#allocation6], 128  }
   0xb   :  { %237 = vsyncadd [#allocation6], 4294967168  ;;  %v242_v0 = vmov 0   ;;  %v243_v1 = vmov 2   ;;  %v244_v2 = vmov 4   ;;  %v245_v4 = vmov 1  }
   0xc   :  { %144 = vset.pattern.permute.xlu0 %v242_v0  ;;  %146 = vset.pattern.permute.xlu1 %v243_v1  ;;  %v43_v3 = vld [vmem:[#allocation2] sm:$0x3]  ;;  %v246_v5 = vmov 3   ;;  %v247_v6 = vmov 5   ;;  %v248_v7 = vmov 6   ;;  %v249_v8 = vmov 7  }
   0xd   :  { %148 = vset.pattern.permute.xlu2 %v244_v2  ;;  %48 = vperm.xlu0 %144, %v43_v3   ;;  %v153_v12 = vld [vmem:[#allocation5] ss:$0 sm:$0xff]  ;;  %v154_v13 = vld [vmem:[%s285_s2] ss:$0 sm:$0xff]  ;;  %v157_v15 = vld [vmem:[#allocation5 + $0x1] ss:$0 sm:$0xff] }
   0xe   :  { %67 = vperm.xlu1 %146, %v43_v3   ;;  %83 = vperm.xlu2 %148, %v43_v3   ;;  %v155_v17 = vld [vmem:[#allocation5 + $0x2] ss:$0 sm:$0xff]  ;;  %v158_v22 = vld [vmem:[#allocation5 + $0x3] ss:$0 sm:$0xff]  ;;  %v156_v24 = vld [vmem:[#allocation5 + $0x4] ss:$0 sm:$0xff] }
   0xf   :  { %v159_v28 = vld [vmem:[#allocation5 + $0x5] ss:$0 sm:$0xff]  ;;  %v160_v29 = vld [vmem:[#allocation5 + $0x6] ss:$0 sm:$0xff]  ;;  %v161_v32 = vld [vmem:[#allocation5 + $0x7] ss:$0 sm:$0xff] }
  0x10   :  { %s250_s2 = smov [#allocation7]   ;;  %s122_s25 = sshll.u32 %s286_s3, 4  ;;  %vm113_vm0 = vcmask 9216   ;;  %s123_s25 = int_to_ptr.hbm [resolvable:$true] %s122_s25 }
  0x11   :  { %s120_s22 = sshll.u32 %s250_s2, 4  ;;  %s121_s22 = int_to_ptr.vmem [resolvable:$true] %s120_s22 }
  0x15   :  { %145 = vset.pattern.permute.xlu0 %v245_v4 }
  0x16   :  { %147 = vset.pattern.permute.xlu1 %v246_v5  ;;  %59 = vperm.xlu0 %145, %v43_v3  }
  0x17   :  { %75 = vperm.xlu1 %147, %v43_v3   ;;  %149 = vset.pattern.permute.xlu2 %v247_v6 }
  0x18   :  { %91 = vperm.xlu2 %149, %v43_v3  }
  0x1e   :  { %152 = vset.pattern.permute.xlu0 %v249_v8 }
  0x1f   :  { %150 = vset.pattern.permute.xlu1 %v248_v7 }
  0x20   :  { %99 = vperm.xlu1 %150, %v43_v3   ;;  %151 = vset.pattern.permute.xlu2 %v249_v8 }
  0x21   :  { %107 = vperm.xlu2 %151, %v43_v3  }
  0x68   :  { %v84_v9 = vpop.permute.xlu2 %83 }
  0x69   :  { %v87_v30 = vmul.f32 %v156_v24, %v84_v9 }
  0x72   :  { %v92_v16 = vpop.permute.xlu2 %91 }
  0x73   :  { %v95_v35 = vmul.f32 %v159_v28, %v92_v16 }
  0x7b   :  { %v108_v33 = vpop.permute.xlu2 %107 }
  0x7c   :  { %v111_v39 = vmul.f32 %v161_v32, %v108_v33 }
  0x7f   :  { %v49_v10 = vpop.permute.xlu0 %48 }
  0x80   :  { %v68_v11 = vpop.permute.xlu1 %67  ;;  %v52_v14 = vmul.f32 %v153_v12, %v49_v10 }
  0x81   :  { %v71_v23 = vmul.f32 %v155_v17, %v68_v11 }
  0x82   :  { %v56_v20 = vadd.f32 %v154_v13, %v52_v14 }
  0x88   :  { %v60_v18 = vpop.permute.xlu0 %59 }
  0x89   :  { %v76_v19 = vpop.permute.xlu1 %75  ;;  %v63_v21 = vmul.f32 %v157_v15, %v60_v18 }
  0x8a   :  { %v79_v27 = vmul.f32 %v158_v22, %v76_v19 }
  0x8b   :  { %v64_v25 = vadd.f32 %v63_v21, %v56_v20 }
  0x8d   :  { %v72_v26 = vadd.f32 %v71_v23, %v64_v25 }
  0x8f   :  { %v80_v31 = vadd.f32 %v79_v27, %v72_v26 }
  0x91   :  { %v88_v34 = vadd.f32 %v87_v30, %v80_v31 }
  0x92   :  { %v100_v36 = vpop.permute.xlu1 %99 }
  0x93   :  { %v103_v37 = vmul.f32 %v160_v29, %v100_v36  ;;  %v96_v38 = vadd.f32 %v95_v35, %v88_v34 }
  0x95   :  { %v104_v40 = vadd.f32 %v103_v37, %v96_v38 }
  0x97   :  { %v112_v41 = vadd.f32 %v111_v39, %v104_v40 }
  0x99   :  { %114 = vst.msk [vmem:[#allocation7] sm:$0x3] %vm113_vm0, %v112_v41 }
  0x9a   :  { %125 = dma.vmem_to_hbm [thread:$0]  %s121_s22, 32, %s123_s25, [#allocation4]  }
  0x9b   :  { %238 = dma.done.wait [#allocation4], 32  }
  0x9c   :  { %239 = vsyncadd [#allocation4], 4294967264 }
  0x9d   :  { %130 = vsyncpa [#allocation3], 1 }
  0x9e   :  { %131 = vsyncpa [#allocation6], 1 }
  0x9f   :  { %132 = vsyncpa [#allocation4], 1 }

</bundles_post_ra>
